<compile_context>
chip_gen: v7x
topology: tpu7x:2x2x1
jax: 0.10.0
libtpu: 0.0.40
codegen_flags: <defaults>
</compile_context>

<pallas_src>
import functools

import jax
import jax.numpy as jnp
from jax.experimental import pallas as pl
from jax.experimental.pallas import tpu as pltpu

SUBLANE = 8
LANE = 128


def _round_up(n, m):
    return ((n + m - 1) // m) * m


def _fused_mlp_kernel(*refs, n_hidden, eps):
    """refs = [n_valid(SMEM), x, (W, b, gamma, beta)*n_hidden, W_last, b_last, out]."""
    n_ref = refs[0]          # SMEM (1,) int32: number of real batch rows
    x_ref = refs[1]
    out_ref = refs[-1]
    p = refs[2:-1]

    n_valid = n_ref[0]
    h = x_ref[...].astype(jnp.float32)

    # Row mask: only the first n_valid (real) rows feed the BN statistics.
    row_ids = jax.lax.broadcasted_iota(jnp.int32, (h.shape[0], 1), 0)
    row_mask = row_ids < n_valid
    inv_b = 1.0 / n_valid.astype(jnp.float32)

    idx = 0
    for _ in range(n_hidden):
        w, b, g, be = p[idx], p[idx + 1], p[idx + 2], p[idx + 3]
        idx += 4
        # Linear: bf16 x bf16 -> f32 accumulation on the MXU; bias add on VPU.
        h = jnp.dot(h.astype(jnp.bfloat16), w[...],
                    preferred_element_type=jnp.float32) + b[...]
        # BatchNorm1d, training-mode batch statistics (biased variance).
        # Two-pass centered form kept on purpose: the one-pass E[x^2]-mean^2
        # variant risks catastrophic cancellation when |mean| >> std.
        hm = jnp.where(row_mask, h, 0.0)
        mean = jnp.sum(hm, axis=0, keepdims=True) * inv_b
        d = h - mean
        var = jnp.sum(jnp.where(row_mask, d * d, 0.0), axis=0, keepdims=True) * inv_b
        h = d * jax.lax.rsqrt(var + eps) * g[...] + be[...]
        # ReLU (the following Dropout(p=0) is the identity).
        h = jnp.maximum(h, 0.0)

    w, b = p[idx], p[idx + 1]
    out_ref[...] = (
        jnp.dot(h.astype(jnp.bfloat16), w[...],
                preferred_element_type=jnp.float32) + b[...]
    ).astype(out_ref.dtype)


def init_mlp_batchnorm_params(key, input_shape, output_shape, hidden_layer,
                              dtype=jnp.float32):
    """nn.Linear init U(-1/sqrt(fan_in), 1/sqrt(fan_in)); BatchNorm1d gamma=1, beta=0.

    Weights are stored (in_features, out_features) -- the transpose of
    torch.nn.Linear.weight -- so each layer is y = x @ W + b.
    """
    dims = [input_shape] + list(hidden_layer) + [output_shape]
    linears = []
    for i in range(len(dims) - 1):
        fan_in, fan_out = dims[i], dims[i + 1]
        key, kw, kb = jax.random.split(key, 3)
        bound = 1.0 / float(fan_in) ** 0.5
        w = jax.random.uniform(kw, (fan_in, fan_out), dtype, -bound, bound)
        b = jax.random.uniform(kb, (fan_out,), dtype, -bound, bound)
        linears.append((w, b))
    bns = [(jnp.ones((h,), dtype), jnp.zeros((h,), dtype)) for h in hidden_layer]
    return linears, bns


def prepare_padded_params(linears, bns, weight_dtype=jnp.bfloat16):
    """One-time preprocessing (hoisted out of the forward path):
    * pad every feature dim to a multiple of 128 (lane),
    * store weights in bf16 for the MXU fast path,
    * store 1-D vectors (bias/gamma/beta) as f32 (1, N_pad) rows.
    Padded gamma/beta/bias/weight entries are zero, so padded feature columns
    stay exactly zero through Linear -> BN -> ReLU and never contaminate the
    next layer.
    """
    n_hidden = len(bns)
    flat = []
    for i, (w, b) in enumerate(linears):
        k, n = w.shape
        kp, np_ = _round_up(k, LANE), _round_up(n, LANE)
        flat.append(jnp.zeros((kp, np_), weight_dtype).at[:k, :n]
                    .set(w.astype(weight_dtype)))
        flat.append(jnp.zeros((1, np_), jnp.float32).at[0, :n]
                    .set(b.astype(jnp.float32)))
        if i < n_hidden:
            g, be = bns[i]
            flat.append(jnp.zeros((1, np_), jnp.float32).at[0, :n]
                        .set(g.astype(jnp.float32)))
            flat.append(jnp.zeros((1, np_), jnp.float32).at[0, :n]
                        .set(be.astype(jnp.float32)))
    return flat


def bucket_inputs(x, bucket_rows=SUBLANE):
    """Caller-side (one-time / batch-assembly-time) bucketing: pad the batch to
    a multiple of 8 sublanes and the feature dim to 128 lanes, and return the
    valid-row count as a (1,) int32 scalar for the kernel's SMEM input."""
    B, K = x.shape
    bp = _round_up(max(B, bucket_rows), bucket_rows)
    kp = _round_up(K, LANE)
    xb = jnp.zeros((bp, kp), x.dtype).at[:B, :K].set(x)
    return xb, jnp.array([B], jnp.int32)


def mlp_batchnorm_forward(x_bucketed, n_valid, padded_params, *, n_hidden, eps=1e-5):
    """Single fused pallas_call for the whole MLP.

    x_bucketed : (bp, kp) with bp % 8 == 0, kp % 128 == 0 (see bucket_inputs).
    n_valid    : (1,) int32, number of real rows (<= bp).
    Returns the padded (bp, N_last_pad) output block; callers slice
    [:n_valid, :output_shape] if/when the unpadded view is needed.
    """
    bp, kp = x_bucketed.shape
    assert bp % SUBLANE == 0 and kp % LANE == 0, "caller must provide bucketed input"
    assert kp == padded_params[0].shape[0], "input feature padding mismatch"
    n_out_pad = padded_params[-1].shape[1]   # (1, N_pad) bias of the last layer

    n_valid = jnp.asarray(n_valid, jnp.int32).reshape((1,))

    # VMEM budget from the actual resident footprint (weights + I/O + a few
    # f32 activation temporaries), with headroom for Mosaic internal scratch.
    max_n = max(p.shape[1] for p in padded_params)
    footprint = sum(int(p.size) * p.dtype.itemsize for p in padded_params)
    footprint += int(x_bucketed.size) * x_bucketed.dtype.itemsize
    footprint += bp * n_out_pad * 4
    footprint += 4 * bp * max_n * 4
    vmem_limit = int(min(100 << 20, max(32 << 20, 2 * footprint + (2 << 20))))

    kernel = functools.partial(_fused_mlp_kernel, n_hidden=n_hidden, eps=eps)

    return pl.pallas_call(
        kernel,
        out_shape=jax.ShapeDtypeStruct((bp, n_out_pad), x_bucketed.dtype),
        # Tiny problem: every operand is a single full-extent, (8,128)-aligned
        # VMEM block, so no grid / pipelining is needed; activations stay in
        # VMEM/vregs between layers.
        in_specs=[pl.BlockSpec(memory_space=pltpu.MemorySpace.SMEM)]
        + [pl.BlockSpec(memory_space=pltpu.MemorySpace.VMEM)]
        * (1 + len(padded_params)),
        out_specs=pl.BlockSpec(memory_space=pltpu.MemorySpace.VMEM),
        compiler_params=pltpu.CompilerParams(vmem_limit_bytes=vmem_limit),
    )(n_valid, x_bucketed, *padded_params)


def reference_forward(x, linears, bns, eps=1e-5, matmul_dtype=None):
    """Pure-JAX reference of the same math (training-mode BatchNorm).
    matmul_dtype=jnp.bfloat16 emulates the kernel's MXU input precision."""
    h = x.astype(jnp.float32)
    n_hidden = len(bns)
    for i, (w, b) in enumerate(linears):
        if matmul_dtype is None:
            h = jnp.dot(h, w, precision=jax.lax.Precision.HIGHEST) + b
        else:
            h = jnp.dot(h.astype(matmul_dtype), w.astype(matmul_dtype),
                        preferred_element_type=jnp.float32) + b
        if i < n_hidden:
            g, be = bns[i]
            mean = jnp.mean(h, axis=0, keepdims=True)
            var = jnp.mean((h - mean) ** 2, axis=0, keepdims=True)
            h = (h - mean) * jax.lax.rsqrt(var + eps) * g + be
            h = jnp.maximum(h, 0.0)
    return h


if __name__ == "__main__":
    key = jax.random.PRNGKey(0)
    k_in, k_param = jax.random.split(key)

    batch = 6                       # real rows (bucketed to 8 below)
    input_shape = 32
    hidden_layer = [64, 48]
    output_shape = 8

    x = jax.random.normal(k_in, (batch, input_shape), jnp.float32)
    linears, bns = init_mlp_batchnorm_params(
        k_param, input_shape, output_shape, hidden_layer)
    padded_params = prepare_padded_params(linears, bns)

    # One-time bucketing (serving folds this into batch assembly, so the
    # pallas_call is the only per-forward device op).
    xb, n_valid = bucket_inputs(x)

    fwd = jax.jit(functools.partial(
        mlp_batchnorm_forward, n_hidden=len(hidden_layer)))
    out_padded = jax.block_until_ready(fwd(xb, n_valid, padded_params))

    # Unpadded view for the correctness check only.
    out = out_padded[:batch, :output_shape]
    assert out.shape == (batch, output_shape)

    # 1) Tight check against a reference that uses the same bf16 matmul inputs
    #    (validates the fused kernel's math: masked batch stats, biased var,
    #    eps placement, padding hygiene).
    ref_bf16 = reference_forward(x, linears, bns, matmul_dtype=jnp.bfloat16)
    assert jnp.allclose(out, ref_bf16, atol=2e-3, rtol=2e-3), (
        float(jnp.max(jnp.abs(out - ref_bf16))))

    # 2) Looser sanity check against the full-f32 reference: bf16 MXU inputs
    #    plus BatchNorm's 1/sqrt(var+eps) amplification bound the achievable
    #    agreement here.
    ref_f32 = reference_forward(x, linears, bns)
    assert jnp.allclose(out, ref_f32, atol=1e-1, rtol=1e-1), (
        float(jnp.max(jnp.abs(out - ref_f32))))

    print("KERNEL_OK")
</pallas_src>

<mosaic_0001>
module attributes {stable_mosaic.version = 11 : i64} {
  func.func @_fused_mlp_kernel(%arg0: memref<1xi32, #tpu.memory_space<smem>>, %arg1: memref<8x128xf32, #tpu.memory_space<vmem>>, %arg2: memref<128x128xbf16, #tpu.memory_space<vmem>>, %arg3: memref<1x128xf32, #tpu.memory_space<vmem>>, %arg4: memref<1x128xf32, #tpu.memory_space<vmem>>, %arg5: memref<1x128xf32, #tpu.memory_space<vmem>>, %arg6: memref<128x128xbf16, #tpu.memory_space<vmem>>, %arg7: memref<1x128xf32, #tpu.memory_space<vmem>>, %arg8: memref<1x128xf32, #tpu.memory_space<vmem>>, %arg9: memref<1x128xf32, #tpu.memory_space<vmem>>, %arg10: memref<128x128xbf16, #tpu.memory_space<vmem>>, %arg11: memref<1x128xf32, #tpu.memory_space<vmem>>, %arg12: memref<8x128xf32, #tpu.memory_space<vmem>>) attributes {dimension_semantics = [], scalar_prefetch = 0 : i64, scratch_operands = 0 : i64, tpu.core_type = #tpu.core_type<tc>} {
    %c0 = arith.constant 0 : index
    %0 = memref.load %arg0[%c0] : memref<1xi32, #tpu.memory_space<smem>>
    %c0_0 = arith.constant 0 : index
    %c0_1 = arith.constant 0 : index
    %1 = vector.load %arg1[%c0_0, %c0_1] : memref<8x128xf32, #tpu.memory_space<vmem>>, vector<8x128xf32>
    %2 = tpu.iota {dimensions = array<i32: 0>} : vector<8x1xi32>
    %3 = vector.broadcast %0 : i32 to vector<8x1xi32>
    %4 = arith.cmpi slt, %2, %3 : vector<8x1xi32>
    %5 = arith.sitofp %0 : i32 to f32
    %cst = arith.constant 1.000000e+00 : f32
    %6 = arith.divf %cst, %5 : f32
    %7 = arith.truncf %1 : vector<8x128xf32> to vector<8x128xbf16>
    %c0_2 = arith.constant 0 : index
    %c0_3 = arith.constant 0 : index
    %8 = vector.load %arg2[%c0_2, %c0_3] : memref<128x128xbf16, #tpu.memory_space<vmem>>, vector<128x128xbf16>
    %cst_4 = arith.constant dense<0.000000e+00> : vector<8x128xf32>
    %9 = tpu.matmul %7, %8, %cst_4 {dimension_numbers = #tpu.dot_dimension_numbers<[1], [0], [0], [1], [0, 0, 1, 1], [], []>} : vector<8x128xbf16>, vector<128x128xbf16>, vector<8x128xf32> -> vector<8x128xf32>
    %c0_5 = arith.constant 0 : index
    %c0_6 = arith.constant 0 : index
    %10 = vector.load %arg3[%c0_5, %c0_6] : memref<1x128xf32, #tpu.memory_space<vmem>>, vector<1x128xf32>
    %11 = vector.broadcast %10 : vector<1x128xf32> to vector<8x128xf32>
    %12 = arith.addf %9, %11 : vector<8x128xf32>
    %cst_7 = arith.constant 0.000000e+00 : f32
    %13 = vector.shape_cast %4 : vector<8x1xi1> to vector<8x1xi1>
    %14 = vector.broadcast %13 : vector<8x1xi1> to vector<8x128xi1>
    %15 = vector.broadcast %cst_7 : f32 to vector<8x128xf32>
    %16 = arith.select %14, %12, %15 : vector<8x128xi1>, vector<8x128xf32>
    %cst_8 = arith.constant dense<0.000000e+00> : vector<128xf32>
    %17 = vector.multi_reduction <add>, %16, %cst_8 [0] : vector<8x128xf32> to vector<128xf32>
    %18 = vector.shape_cast %17 : vector<128xf32> to vector<1x128xf32>
    %19 = vector.broadcast %6 : f32 to vector<1x128xf32>
    %20 = arith.mulf %18, %19 : vector<1x128xf32>
    %21 = vector.broadcast %20 : vector<1x128xf32> to vector<8x128xf32>
    %22 = arith.subf %12, %21 : vector<8x128xf32>
    %23 = arith.mulf %22, %22 : vector<8x128xf32>
    %cst_9 = arith.constant 0.000000e+00 : f32
    %24 = vector.shape_cast %4 : vector<8x1xi1> to vector<8x1xi1>
    %25 = vector.broadcast %24 : vector<8x1xi1> to vector<8x128xi1>
    %26 = vector.broadcast %cst_9 : f32 to vector<8x128xf32>
    %27 = arith.select %25, %23, %26 : vector<8x128xi1>, vector<8x128xf32>
    %cst_10 = arith.constant dense<0.000000e+00> : vector<128xf32>
    %28 = vector.multi_reduction <add>, %27, %cst_10 [0] : vector<8x128xf32> to vector<128xf32>
    %29 = vector.shape_cast %28 : vector<128xf32> to vector<1x128xf32>
    %30 = vector.broadcast %6 : f32 to vector<1x128xf32>
    %31 = arith.mulf %29, %30 : vector<1x128xf32>
    %cst_11 = arith.constant 9.99999974E-6 : f32
    %32 = vector.broadcast %cst_11 : f32 to vector<1x128xf32>
    %33 = arith.addf %31, %32 : vector<1x128xf32>
    %34 = math.rsqrt %33 : vector<1x128xf32>
    %35 = vector.broadcast %34 : vector<1x128xf32> to vector<8x128xf32>
    %36 = arith.mulf %22, %35 : vector<8x128xf32>
    %c0_12 = arith.constant 0 : index
    %c0_13 = arith.constant 0 : index
    %37 = vector.load %arg4[%c0_12, %c0_13] : memref<1x128xf32, #tpu.memory_space<vmem>>, vector<1x128xf32>
    %38 = vector.broadcast %37 : vector<1x128xf32> to vector<8x128xf32>
    %39 = arith.mulf %36, %38 : vector<8x128xf32>
    %c0_14 = arith.constant 0 : index
    %c0_15 = arith.constant 0 : index
    %40 = vector.load %arg5[%c0_14, %c0_15] : memref<1x128xf32, #tpu.memory_space<vmem>>, vector<1x128xf32>
    %41 = vector.broadcast %40 : vector<1x128xf32> to vector<8x128xf32>
    %42 = arith.addf %39, %41 : vector<8x128xf32>
    %cst_16 = arith.constant 0.000000e+00 : f32
    %43 = vector.broadcast %cst_16 : f32 to vector<8x128xf32>
    %44 = arith.maximumf %42, %43 : vector<8x128xf32>
    %45 = arith.truncf %44 : vector<8x128xf32> to vector<8x128xbf16>
    %c0_17 = arith.constant 0 : index
    %c0_18 = arith.constant 0 : index
    %46 = vector.load %arg6[%c0_17, %c0_18] : memref<128x128xbf16, #tpu.memory_space<vmem>>, vector<128x128xbf16>
    %cst_19 = arith.constant dense<0.000000e+00> : vector<8x128xf32>
    %47 = tpu.matmul %45, %46, %cst_19 {dimension_numbers = #tpu.dot_dimension_numbers<[1], [0], [0], [1], [0, 0, 1, 1], [], []>} : vector<8x128xbf16>, vector<128x128xbf16>, vector<8x128xf32> -> vector<8x128xf32>
    %c0_20 = arith.constant 0 : index
    %c0_21 = arith.constant 0 : index
    %48 = vector.load %arg7[%c0_20, %c0_21] : memref<1x128xf32, #tpu.memory_space<vmem>>, vector<1x128xf32>
    %49 = vector.broadcast %48 : vector<1x128xf32> to vector<8x128xf32>
    %50 = arith.addf %47, %49 : vector<8x128xf32>
    %cst_22 = arith.constant 0.000000e+00 : f32
    %51 = vector.shape_cast %4 : vector<8x1xi1> to vector<8x1xi1>
    %52 = vector.broadcast %51 : vector<8x1xi1> to vector<8x128xi1>
    %53 = vector.broadcast %cst_22 : f32 to vector<8x128xf32>
    %54 = arith.select %52, %50, %53 : vector<8x128xi1>, vector<8x128xf32>
    %cst_23 = arith.constant dense<0.000000e+00> : vector<128xf32>
    %55 = vector.multi_reduction <add>, %54, %cst_23 [0] : vector<8x128xf32> to vector<128xf32>
    %56 = vector.shape_cast %55 : vector<128xf32> to vector<1x128xf32>
    %57 = vector.broadcast %6 : f32 to vector<1x128xf32>
    %58 = arith.mulf %56, %57 : vector<1x128xf32>
    %59 = vector.broadcast %58 : vector<1x128xf32> to vector<8x128xf32>
    %60 = arith.subf %50, %59 : vector<8x128xf32>
    %61 = arith.mulf %60, %60 : vector<8x128xf32>
    %cst_24 = arith.constant 0.000000e+00 : f32
    %62 = vector.shape_cast %4 : vector<8x1xi1> to vector<8x1xi1>
    %63 = vector.broadcast %62 : vector<8x1xi1> to vector<8x128xi1>
    %64 = vector.broadcast %cst_24 : f32 to vector<8x128xf32>
    %65 = arith.select %63, %61, %64 : vector<8x128xi1>, vector<8x128xf32>
    %cst_25 = arith.constant dense<0.000000e+00> : vector<128xf32>
    %66 = vector.multi_reduction <add>, %65, %cst_25 [0] : vector<8x128xf32> to vector<128xf32>
    %67 = vector.shape_cast %66 : vector<128xf32> to vector<1x128xf32>
    %68 = vector.broadcast %6 : f32 to vector<1x128xf32>
    %69 = arith.mulf %67, %68 : vector<1x128xf32>
    %cst_26 = arith.constant 9.99999974E-6 : f32
    %70 = vector.broadcast %cst_26 : f32 to vector<1x128xf32>
    %71 = arith.addf %69, %70 : vector<1x128xf32>
    %72 = math.rsqrt %71 : vector<1x128xf32>
    %73 = vector.broadcast %72 : vector<1x128xf32> to vector<8x128xf32>
    %74 = arith.mulf %60, %73 : vector<8x128xf32>
    %c0_27 = arith.constant 0 : index
    %c0_28 = arith.constant 0 : index
    %75 = vector.load %arg8[%c0_27, %c0_28] : memref<1x128xf32, #tpu.memory_space<vmem>>, vector<1x128xf32>
    %76 = vector.broadcast %75 : vector<1x128xf32> to vector<8x128xf32>
    %77 = arith.mulf %74, %76 : vector<8x128xf32>
    %c0_29 = arith.constant 0 : index
    %c0_30 = arith.constant 0 : index
    %78 = vector.load %arg9[%c0_29, %c0_30] : memref<1x128xf32, #tpu.memory_space<vmem>>, vector<1x128xf32>
    %79 = vector.broadcast %78 : vector<1x128xf32> to vector<8x128xf32>
    %80 = arith.addf %77, %79 : vector<8x128xf32>
    %cst_31 = arith.constant 0.000000e+00 : f32
    %81 = vector.broadcast %cst_31 : f32 to vector<8x128xf32>
    %82 = arith.maximumf %80, %81 : vector<8x128xf32>
    %83 = arith.truncf %82 : vector<8x128xf32> to vector<8x128xbf16>
    %c0_32 = arith.constant 0 : index
    %c0_33 = arith.constant 0 : index
    %84 = vector.load %arg10[%c0_32, %c0_33] : memref<128x128xbf16, #tpu.memory_space<vmem>>, vector<128x128xbf16>
    %cst_34 = arith.constant dense<0.000000e+00> : vector<8x128xf32>
    %85 = tpu.matmul %83, %84, %cst_34 {dimension_numbers = #tpu.dot_dimension_numbers<[1], [0], [0], [1], [0, 0, 1, 1], [], []>} : vector<8x128xbf16>, vector<128x128xbf16>, vector<8x128xf32> -> vector<8x128xf32>
    %c0_35 = arith.constant 0 : index
    %c0_36 = arith.constant 0 : index
    %86 = vector.load %arg11[%c0_35, %c0_36] : memref<1x128xf32, #tpu.memory_space<vmem>>, vector<1x128xf32>
    %87 = vector.broadcast %86 : vector<1x128xf32> to vector<8x128xf32>
    %88 = arith.addf %85, %87 : vector<8x128xf32>
    %c0_37 = arith.constant 0 : index
    %c0_38 = arith.constant 0 : index
    %89 = vector.load %arg12[%c0_37, %c0_38] : memref<8x128xf32, #tpu.memory_space<vmem>>, vector<8x128xf32>
    tpu.vector_store %arg12[%c0_37, %c0_38], %88 {strides = array<i32>} : memref<8x128xf32, #tpu.memory_space<vmem>>, vector<8x128xf32>,
    return
  }
}

</mosaic_0001>

<bundles_post_ra>
// kernel: mlp_batchnorm_forward.1
= control target key start
LH: loop header
LB: loop body
LE: loop exit
PB: predicated region body
PF: predicated region fallthrough
CT: control target
= control target key end

     0   :  { %18 = vsyncpa [#allocation4], 0  ;;  %s1035_s0 = inlined_call_operand.<no memory space> [shape: s32[1], index: 0, kind: input, shape index: {}]   ;;  %s1036_s1 = inlined_call_operand.hbm [shape: f32[8,128], index: 1, kind: input, shape index: {}]   ;;  %s1037_s2 = inlined_call_operand.hbm [shape: bf16[128,128], index: 2, kind: input, shape index: {}]   ;;  %s1038_s3 = inlined_call_operand.vmem [shape: f32[1,128], index: 3, kind: input, shape index: {}]   ;;  %s1039_s4 = inlined_call_operand.vmem [shape: f32[1,128], index: 4, kind: input, shape index: {}]   ;;  %s1040_s5 = inlined_call_operand.vmem [shape: f32[1,128], index: 5, kind: input, shape index: {}]   ;;  %s1041_s6 = inlined_call_operand.hbm [shape: bf16[128,128], index: 6, kind: input, shape index: {}]   ;;  %s1042_s7 = inlined_call_operand.vmem [shape: f32[1,128], index: 7, kind: input, shape index: {}]   ;;  %s1043_s8 = inlined_call_operand.vmem [shape: f32[1,128], index: 8, kind: input, shape index: {}]   ;;  %s1044_s9 = inlined_call_operand.vmem [shape: f32[1,128], index: 9, kind: input, shape index: {}]   ;;  %s1045_s10 = inlined_call_operand.hbm [shape: bf16[128,128], index: 10, kind: input, shape index: {}]   ;;  %s1046_s11 = inlined_call_operand.vmem [shape: f32[1,128], index: 11, kind: input, shape index: {}]   ;;  %s1047_s12 = inlined_call_operand.hbm [shape: f32[8,128], index: 12, kind: output, shape index: {}]  }
   0x1   :  { %19 = vsyncpa [#allocation7], 0 }
   0x2   :  { %20 = vsyncpa [#allocation10], 0 }
   0x3   :  { %21 = vsyncpa [#allocation5], 0  ;;  %s817_s21 = smov [#allocation6]   ;;  %s699_s25 = scalar_lea.hbm %s1037_s2, 1024 }
   0x4   :  { %s39_s22 = sshll.u32 %s817_s21, 4  ;;  %p700_p0 = scmp.ne.s32.totalorder %s1037_s2, %s699_s25  ;;  %s40_s22 = int_to_ptr.vmem [resolvable:$true] %s39_s22 }
   0x5   :  { %p703_p1 = scmp.lt.u32.totalorder %s699_s25, %s1037_s2 }
   0x7   :  { %p705_p2 = pnand %p703_p1, %p700_p0 }
   0x9   :  { %708 = shalt.err (!%p705_p2)
}
   0xa   :  { %s709_s30 = scalar_lea.vmem %s40_s22, 1024  ;;  %p714_p4 = scmp.lt.s32.totalorder %s40_s22, %s40_s22 }
   0xb   :  { %p710_p3 = scmp.ne.s32.totalorder %s40_s22, %s709_s30  ;;  %p715_p5 = scmp.lt.s32.totalorder %s709_s30, %s709_s30 }
   0xd   :  { %p716_p6 = por %p715_p5, %p714_p4 }
   0xf   :  { %p717_p7 = pnand %p716_p6, %p710_p3 }
  0x11   :  { %720 = shalt.err (!%p717_p7)
}
  0x12   :  { %s818_s13 = smov 64   ;;  %s819_s14 = smov 4  }
  0x13   :  { %45 = dma.hbm_to_vmem [thread:$0]  %s1037_s2, 1024, %s40_s22, [#allocation7], %s818_s13, %s818_s13, %s819_s14  }
  0x14   :  { %s820_s17 = smov [#allocation3]   ;;  %s821_s19 = smov [#allocation8]  }
  0x15   :  { %s30_s18 = sshll.u32 %s820_s17, 4  ;;  %s57_s20 = sshll.u32 %s821_s19, 4  ;;  %s31_s18 = int_to_ptr.vmem [resolvable:$true] %s30_s18  ;;  %s58_s20 = int_to_ptr.vmem [resolvable:$true] %s57_s20 }
  0x16   :  { %s721_s24 = scalar_lea.hbm %s1036_s1, 128 }
  0x17   :  { %p722_p8 = scmp.ne.s32.totalorder %s1036_s1, %s721_s24  ;;  %p725_p9 = scmp.lt.u32.totalorder %s721_s24, %s1036_s1 }
  0x19   :  { %p727_p10 = pnand %p725_p9, %p722_p8 }
  0x1b   :  { %730 = shalt.err (!%p727_p10)
}
  0x1c   :  { %s731_s2 = scalar_lea.vmem %s31_s18, 128  ;;  %p736_p12 = scmp.lt.s32.totalorder %s31_s18, %s31_s18 }
  0x1d   :  { %p732_p11 = scmp.ne.s32.totalorder %s31_s18, %s731_s2  ;;  %p737_p13 = scmp.lt.s32.totalorder %s731_s2, %s731_s2 }
  0x1f   :  { %p738_p0 = por %p737_p13, %p736_p12 }
  0x21   :  { %p739_p1 = pnand %p738_p0, %p732_p11 }
  0x23   :  { %742 = shalt.err (!%p739_p1)
}
  0x24   :  { %33 = dma.hbm_to_vmem [thread:$0]  %s1036_s1, 128, %s31_s18, [#allocation4]  }
  0x25   :  { %s743_s16 = scalar_lea.hbm %s1041_s6, 1024 }
  0x26   :  { %p744_p2 = scmp.ne.s32.totalorder %s1041_s6, %s743_s16  ;;  %p747_p3 = scmp.lt.u32.totalorder %s743_s16, %s1041_s6 }
  0x28   :  { %p749_p4 = pnand %p747_p3, %p744_p2 }
  0x2a   :  { %752 = shalt.err (!%p749_p4)
}
  0x2b   :  { %s753_s24 = scalar_lea.vmem %s58_s20, 1024  ;;  %p758_p6 = scmp.lt.s32.totalorder %s58_s20, %s58_s20 }
  0x2c   :  { %p754_p5 = scmp.ne.s32.totalorder %s58_s20, %s753_s24  ;;  %p759_p7 = scmp.lt.s32.totalorder %s753_s24, %s753_s24 }
  0x2e   :  { %p760_p8 = por %p759_p7, %p758_p6 }
  0x30   :  { %p761_p9 = pnand %p760_p8, %p754_p5 }
  0x32   :  { %764 = shalt.err (!%p761_p9)
}
  0x33   :  { %63 = dma.hbm_to_vmem [thread:$0]  %s1041_s6, 1024, %s58_s20, [#allocation7], %s818_s13, %s818_s13, %s819_s14  }
  0x34   :  { %s822_s25 = smov [#allocation9]   ;;  %s765_s2 = scalar_lea.hbm %s1045_s10, 1024 }
  0x35   :  { %s75_s26 = sshll.u32 %s822_s25, 4  ;;  %p766_p10 = scmp.ne.s32.totalorder %s1045_s10, %s765_s2  ;;  %s76_s26 = int_to_ptr.vmem [resolvable:$true] %s75_s26 }
  0x36   :  { %p769_p11 = scmp.lt.u32.totalorder %s765_s2, %s1045_s10 }
  0x38   :  { %p771_p12 = pnand %p769_p11, %p766_p10 }
  0x3a   :  { %774 = shalt.err (!%p771_p12)
}
  0x3b   :  { %s775_s16 = scalar_lea.vmem %s76_s26, 1024  ;;  %p780_p0 = scmp.lt.s32.totalorder %s76_s26, %s76_s26 }
  0x3c   :  { %p776_p13 = scmp.ne.s32.totalorder %s76_s26, %s775_s16  ;;  %p781_p1 = scmp.lt.s32.totalorder %s775_s16, %s775_s16 }
  0x3e   :  { %p782_p2 = por %p781_p1, %p780_p0 }
  0x40   :  { %p783_p3 = pnand %p782_p2, %p776_p13 }
  0x42   :  { %786 = shalt.err (!%p783_p3)
}
  0x43   :  { %81 = dma.hbm_to_vmem [thread:$0]  %s1045_s10, 1024, %s76_s26, [#allocation10], %s818_s13, %s818_s13, %s819_s14  }
  0x44   :  { %809 = dma.done.wait [#allocation4], 128  }
  0x45   :  { %810 = vsyncadd [#allocation4], 4294967168 }
  0x46   :  { %811 = dma.done.wait [#allocation7], 2048  }
  0x47   :  { %812 = vsyncadd [#allocation7], 4294965248 }
  0x48   :  { %813 = dma.done.wait [#allocation10], 1024  }
  0x49   :  { %814 = vsyncadd [#allocation10], 4294966272  ;;  %s103_s21 = scvt.s32.f32 %s1035_s0  ;;  %v823_v0 = vmov 0.0   ;;  %vm824_vm0 = vmmov 0   ;;  %v669_v2 = vld [vmem:[#allocation6] sm:$0xff]   ;;  %v670_v3 = vld [vmem:[#allocation6 + $0x8] sm:$0xff]   ;;  %v99_v21 = vlaneseq  ;;  %v101_v23 = vstv %s1035_s0 }
  0x4a   :  { %598 = vmatprep.subr.bf16.mxu0 %v823_v0  ;;  %614 = vmatprep.mubr.msk.bf16.mxu0 %vm824_vm0, %v823_v0  ;;  %v671_v5 = vld [vmem:[#allocation6 + $0x10] sm:$0xff]   ;;  %v672_v6 = vld [vmem:[#allocation6 + $0x18] sm:$0xff]   ;;  %v673_v7 = vld [vmem:[#allocation6 + $0x20] sm:$0xff]   ;;  %s825_s22 = smov [#allocation11]  }
  0x4b   :  { %v104_v1 = vstv %s103_s21  ;;  %618 = vmatprep.subr.bf16.mxu1 %v823_v0  ;;  %634 = vmatprep.mubr.msk.bf16.mxu1 %vm824_vm0, %v823_v0  ;;  %v674_v8 = vld [vmem:[#allocation6 + $0x28] sm:$0xff]   ;;  %v675_v9 = vld [vmem:[#allocation6 + $0x30] sm:$0xff]   ;;  %v676_v10 = vld [vmem:[#allocation6 + $0x38] sm:$0xff]   ;;  %v100_v22 = vshrl.u32 %v99_v21, 7  ;;  %s529_s29 = sshll.u32 %s825_s22, 4  ;;  %s530_s29 = int_to_ptr.vmem [resolvable:$true] %s529_s29 }
  0x4c   :  { %693 = vrcp.f32 %v104_v1  ;;  %599 = vmatpush3.bf16.msra.mxu0 %v669_v2  ;;  %v98_v11 = vld [vmem:[#allocation3] sm:$0xff]  ;;  %v677_v13 = vld [vmem:[#allocation8] sm:$0xff]   ;;  %v678_v14 = vld [vmem:[#allocation8 + $0x8] sm:$0xff]   ;;  %p792_p5 = scmp.lt.s32.totalorder %s530_s29, %s530_s29 }
  0x4d   :  { %600 = vmatprep.subr.bf16.mxu0 %v823_v0  ;;  %v107_v12 = vpack.c.bf16 %v98_v11, %v98_v11  ;;  %619 = vmatpush3.bf16.msra.mxu1 %v677_v13  ;;  %v679_v15 = vld [vmem:[#allocation8 + $0x10] sm:$0xff]   ;;  %v680_v16 = vld [vmem:[#allocation8 + $0x18] sm:$0xff]   ;;  %v681_v17 = vld [vmem:[#allocation8 + $0x20] sm:$0xff]   ;;  %vm980_vm1 = vcmp.lt.s32.totalorder %v100_v22, %v101_v23 }
  0x4e   :  { %620 = vmatprep.subr.bf16.mxu1 %v823_v0  ;;  %v682_v18 = vld [vmem:[#allocation8 + $0x28] sm:$0xff]   ;;  %v683_v19 = vld [vmem:[#allocation8 + $0x30] sm:$0xff]   ;;  %v684_v20 = vld [vmem:[#allocation8 + $0x38] sm:$0xff]  }
  0x4f   :  { %v540_v24 = vld [vmem:[%s1038_s3] ss:$0 sm:$0xff]  ;;  %v685_v59 = vld [vmem:[#allocation9] sm:$0xff]   ;;  %v686_v60 = vld [vmem:[#allocation9 + $0x8] sm:$0xff]  }
  0x50   :  { %601 = vmatpush3.bf16.msra.mxu0 %v670_v3  ;;  %v549_v52 = vld [vmem:[%s1039_s4] ss:$0 sm:$0xff]  ;;  %v687_v61 = vld [vmem:[#allocation9 + $0x10] sm:$0xff]   ;;  %v689_v63 = vld [vmem:[#allocation9 + $0x20] sm:$0xff]  }
  0x51   :  { %602 = vmatprep.subr.bf16.mxu0 %v823_v0  ;;  %621 = vmatpush3.bf16.msra.mxu1 %v678_v14  ;;  %v550_v54 = vld [vmem:[%s1040_s5] ss:$0 sm:$0xff]  ;;  %v690_v1 = vld [vmem:[#allocation9 + $0x28] sm:$0xff]   ;;  %v691_v2 = vld [vmem:[#allocation9 + $0x30] sm:$0xff]  }
  0x52   :  { %622 = vmatprep.subr.bf16.mxu1 %v823_v0  ;;  %v688_v62 = vld [vmem:[#allocation9 + $0x18] sm:$0xff]  }
  0x53   :  { %v692_v3 = vld [vmem:[#allocation9 + $0x38] sm:$0xff]  }
  0x54   :  { %603 = vmatpush3.bf16.msra.mxu0 %v671_v5  ;;  %v561_v25 = vld [vmem:[%s1044_s9] ss:$0 sm:$0xff] }
  0x55   :  { %604 = vmatprep.subr.bf16.mxu0 %v823_v0  ;;  %623 = vmatpush3.bf16.msra.mxu1 %v679_v15 }
  0x56   :  { %v694_v4 = vpop.eup %693  ;;  %624 = vmatprep.subr.bf16.mxu1 %v823_v0 }
  0x57   :  { %658 = vpush %v694_v4  ;;  %v551_v4 = vld [vmem:[%s1042_s7] ss:$0 sm:$0xff] }
  0x58   :  { %605 = vmatpush3.bf16.msra.mxu0 %v672_v6 }
  0x59   :  { %606 = vmatprep.subr.bf16.mxu0 %v823_v0  ;;  %625 = vmatpush3.bf16.msra.mxu1 %v680_v16 }
  0x5a   :  { %626 = vmatprep.subr.bf16.mxu1 %v823_v0 }
  0x5c   :  { %607 = vmatpush3.bf16.msra.mxu0 %v673_v7 }
  0x5d   :  { %608 = vmatprep.subr.bf16.mxu0 %v823_v0  ;;  %627 = vmatpush3.bf16.msra.mxu1 %v681_v17 }
  0x5e   :  { %628 = vmatprep.subr.bf16.mxu1 %v823_v0 }
  0x60   :  { %609 = vmatpush3.bf16.msra.mxu0 %v674_v8 }
  0x61   :  { %610 = vmatprep.subr.bf16.mxu0 %v823_v0  ;;  %629 = vmatpush3.bf16.msra.mxu1 %v682_v18 }
  0x62   :  { %630 = vmatprep.subr.bf16.mxu1 %v823_v0 }
  0x64   :  { %611 = vmatpush3.bf16.msra.mxu0 %v675_v9 }
  0x65   :  { %612 = vmatprep.subr.bf16.mxu0 %v823_v0  ;;  %631 = vmatpush3.bf16.msra.mxu1 %v683_v19 }
  0x66   :  { %632 = vmatprep.subr.bf16.mxu1 %v823_v0 }
  0x68   :  { %613 = vmatpush3.bf16.msra.mxu0 %v676_v10 }
  0x69   :  { %638 = vmatprep.subr.bf16.mxu0 %v823_v0  ;;  %633 = vmatpush3.bf16.msra.mxu1 %v684_v20 }
  0x6b   :  { %615 = vmatmul.mubr.bf16.vlgmr.msra.gmra.mrb[0].mxu0 %v107_v12 }
  0x6c   :  { %654 = vmatprep.mubr.msk.bf16.mxu0 %vm824_vm0, %v823_v0  ;;  %639 = vmatpush3.bf16.msra.mxu0 %v685_v59 }
  0x6d   :  { %640 = vmatprep.subr.bf16.mxu0 %v823_v0 }
  0x70   :  { %641 = vmatpush3.bf16.msra.mxu0 %v686_v60 }
  0x71   :  { %642 = vmatprep.subr.bf16.mxu0 %v823_v0 }
  0x74   :  { %643 = vmatpush3.bf16.msra.mxu0 %v687_v61 }
  0x75   :  { %644 = vmatprep.subr.bf16.mxu0 %v823_v0 }
  0x78   :  { %645 = vmatpush3.bf16.msra.mxu0 %v688_v62 }
  0x79   :  { %646 = vmatprep.subr.bf16.mxu0 %v823_v0 }
  0x7c   :  { %647 = vmatpush3.bf16.msra.mxu0 %v689_v63 }
  0x7d   :  { %648 = vmatprep.subr.bf16.mxu0 %v823_v0 }
  0x80   :  { %649 = vmatpush3.bf16.msra.mxu0 %v690_v1 }
  0x81   :  { %650 = vmatprep.subr.bf16.mxu0 %v823_v0 }
  0x84   :  { %651 = vmatpush3.bf16.msra.mxu0 %v691_v2 }
  0x85   :  { %652 = vmatprep.subr.bf16.mxu0 %v823_v0 }
  0x88   :  { %s659_s0 = spop %658  ;;  %653 = vmatpush3.bf16.msra.mxu0 %v692_v3 }
  0x89   :  { %v986_v37 = vstv %s659_s0 }
 0x13e   :  { %v213_v26 = vpop.f32.mrb[0].mxu0 }
 0x13f   :  { %v214_v27 = vadd.f32 %v540_v24, %v213_v26  ;;  %v616_v28 = vpop.f32.mrb[1].mxu0 }
 0x140   :  { %v216_v29 = vpop.f32.mrb[2].mxu0 }
 0x141   :  { %v221_v30 = vsel %vm980_vm1, %v214_v27, 0.0  ;;  %v617_v31 = vpop.f32.mrb[3].mxu0 }
 0x142   :  { %v222_v32 = vrot.slane %v221_v30, 4 }
 0x144   :  { %v223_v33 = vadd.f32 %v222_v32, %v221_v30  ;;  %v560_v30 = vld [vmem:[%s1043_s8] ss:$0 sm:$0xff]  ;;  %s787_s8 = scalar_lea.vmem %s530_s29, 128 }
 0x145   :  { %p788_p4 = scmp.ne.s32.totalorder %s530_s29, %s787_s8  ;;  %p793_p6 = scmp.lt.s32.totalorder %s787_s8, %s787_s8 }
 0x146   :  { %v224_v34 = vrot.slane %v223_v33, 2 }
 0x147   :  { %p794_p7 = por %p793_p6, %p792_p5 }
 0x148   :  { %v225_v35 = vadd.f32 %v224_v34, %v223_v33 }
 0x149   :  { %p795_p8 = pnand %p794_p7, %p788_p4 }
 0x14a   :  { %v226_v36 = vrot.slane %v225_v35, 1 }
 0x14c   :  { %v227_v38 = vadd.f32 %v226_v36, %v225_v35  ;;  %v562_v36 = vld [vmem:[%s1046_s11] ss:$0 sm:$0xff] }
 0x14e   :  { %v229_v39 = vmul.f32 %v986_v37, %v227_v38 }
 0x150   :  { %v230_v40 = vsub.f32 %v214_v27, %v229_v39 }
 0x152   :  { %v231_v41 = vmul.f32 %v230_v40, %v230_v40 }
 0x154   :  { %v232_v42 = vsel %vm980_vm1, %v231_v41, 0.0 }
 0x155   :  { %v233_v43 = vrot.slane %v232_v42, 4 }
 0x157   :  { %v234_v44 = vadd.f32 %v233_v43, %v232_v42 }
 0x159   :  { %v235_v45 = vrot.slane %v234_v44, 2 }
 0x15b   :  { %v236_v46 = vadd.f32 %v235_v45, %v234_v44 }
 0x15d   :  { %v237_v47 = vrot.slane %v236_v46, 1 }
 0x15f   :  { %v238_v48 = vadd.f32 %v237_v47, %v236_v46 }
 0x161   :  { %v239_v49 = vmul.f32 %v238_v48, %v986_v37 }
 0x163   :  { %v240_v50 = vadd.f32 1e-05, %v239_v49 }
 0x165   :  { %695 = vrsqrt.f32 %v240_v50 }
 0x16f   :  { %v696_v51 = vpop.eup %695 }
 0x170   :  { %v242_v53 = vmul.f32 %v696_v51, %v230_v40 }
 0x172   :  { %v250_v55 = vmul.f32 %v549_v52, %v242_v53 }
 0x174   :  { %v258_v56 = vadd.f32 %v550_v54, %v250_v55 }
 0x176   :  { %v259_v57 = vmax.f32 %v258_v56, 0.0 }
 0x178   :  { %v260_v58 = vpack.c.bf16 %v259_v57, %v259_v57 }
 0x17a   :  { %635 = vmatmul.mubr.bf16.vlgmr.msra.gmra.mrb[0].mxu1 %v260_v58 }
 0x24d   :  { %v366_v5 = vpop.f32.mrb[0].mxu1 }
 0x24e   :  { %v367_v6 = vadd.f32 %v551_v4, %v366_v5  ;;  %v636_v7 = vpop.f32.mrb[1].mxu1 }
 0x24f   :  { %v369_v8 = vpop.f32.mrb[2].mxu1 }
 0x250   :  { %v372_v9 = vsel %vm980_vm1, %v367_v6, 0.0  ;;  %v637_v10 = vpop.f32.mrb[3].mxu1 }
 0x251   :  { %v373_v11 = vrot.slane %v372_v9, 4 }
 0x253   :  { %v374_v12 = vadd.f32 %v373_v11, %v372_v9 }
 0x255   :  { %v375_v13 = vrot.slane %v374_v12, 2 }
 0x257   :  { %v376_v14 = vadd.f32 %v375_v13, %v374_v12 }
 0x259   :  { %v377_v15 = vrot.slane %v376_v14, 1 }
 0x25b   :  { %v378_v16 = vadd.f32 %v377_v15, %v376_v14 }
 0x25d   :  { %v379_v0 = vmul.f32 %v378_v16, %v986_v37 }
 0x25f   :  { %v380_v17 = vsub.f32 %v367_v6, %v379_v0 }
 0x261   :  { %v381_v18 = vmul.f32 %v380_v17, %v380_v17 }
 0x263   :  { %v382_v19 = vsel %vm980_vm1, %v381_v18, 0.0 }
 0x264   :  { %v383_v20 = vrot.slane %v382_v19, 4 }
 0x266   :  { %v384_v21 = vadd.f32 %v383_v20, %v382_v19 }
 0x268   :  { %v385_v22 = vrot.slane %v384_v21, 2 }
 0x26a   :  { %v386_v23 = vadd.f32 %v385_v22, %v384_v21 }
 0x26c   :  { %v387_v24 = vrot.slane %v386_v23, 1 }
 0x26e   :  { %v388_v26 = vadd.f32 %v387_v24, %v386_v23 }
 0x270   :  { %v389_v27 = vmul.f32 %v388_v26, %v986_v37 }
 0x272   :  { %v390_v28 = vadd.f32 1e-05, %v389_v27 }
 0x274   :  { %697 = vrsqrt.f32 %v390_v28 }
 0x27e   :  { %v698_v29 = vpop.eup %697 }
 0x27f   :  { %v392_v31 = vmul.f32 %v698_v29, %v380_v17 }
 0x281   :  { %v400_v32 = vmul.f32 %v560_v30, %v392_v31 }
 0x283   :  { %v408_v33 = vadd.f32 %v561_v25, %v400_v32 }
 0x285   :  { %v409_v34 = vmax.f32 %v408_v33, 0.0 }
 0x287   :  { %v410_v35 = vpack.c.bf16 %v409_v34, %v409_v34 }
 0x289   :  { %655 = vmatmul.mubr.bf16.vlgmr.msra.gmra.mrb[4].mxu0 %v410_v35 }
 0x35c   :  { %v516_v37 = vpop.f32.mrb[4].mxu0 }
 0x35d   :  { %v517_v38 = vadd.f32 %v562_v36, %v516_v37  ;;  %v656_v39 = vpop.f32.mrb[5].mxu0 }
 0x35e   :  { %v519_v40 = vpop.f32.mrb[6].mxu0 }
 0x35f   :  { %522 = vst [vmem:[#allocation11] sm:$0xff] %v517_v38  ;;  %v657_v41 = vpop.f32.mrb[7].mxu0 }
 0x360   :  { %798 = shalt.err (!%p795_p8)
}
 0x361   :  { %s799_s11 = scalar_lea.hbm %s1047_s12, 128 }
 0x362   :  { %p800_p9 = scmp.ne.s32.totalorder %s1047_s12, %s799_s11  ;;  %p803_p10 = scmp.lt.u32.totalorder %s799_s11, %s1047_s12 }
 0x364   :  { %p805_p11 = pnand %p803_p10, %p800_p9 }
 0x366   :  { %808 = shalt.err (!%p805_p11)
}
 0x367   :  { %532 = dma.vmem_to_hbm [thread:$0]  %s530_s29, 128, %s1047_s12, [#allocation5]  }
 0x368   :  { %815 = dma.done.wait [#allocation5], 128  }
 0x369   :  { %816 = vsyncadd [#allocation5], 4294967168 }
 0x36a   :  { %536 = vsyncpa [#allocation4], 1 }
 0x36b   :  { %537 = vsyncpa [#allocation7], 1 }
 0x36c   :  { %538 = vsyncpa [#allocation10], 1 }
 0x36d   :  { %539 = vsyncpa [#allocation5], 1 }

</bundles_post_ra>
